<compile_context>
chip_gen: v7x
topology: tpu7x:2x2x1
jax: 0.10.0
libtpu: 0.0.40
codegen_flags: <defaults>
</compile_context>

<pallas_src>
import numpy as np
import jax
import jax.numpy as jnp
from jax import lax
from jax.experimental import pallas as pl
from jax.experimental.pallas import tpu as pltpu

EPS = 1e-5
KSIZE = 7
KPAD = 3


# ----------------------------- Pallas kernel ------------------------------- #
def basic_block_kernel(x_ref, wconv_ref, bn_ref, wca1_ref, wca2_ref, tsa_ref,
                       o_ref):
    C = x_ref.shape[1]
    x = x_ref[0]                                   # (C, HW) f32, lane axis = HW

    wc = wconv_ref[...]                            # (2C, C) bf16: rows [w1; w2]
    w1 = wc[:C, :]
    w2 = wc[C:, :]
    bn = bn_ref[...]                               # (C, 4) f32: [s1, b1, s2, b2]

    # conv1 (1x1) + bn1 (folded) + relu
    h = jnp.dot(w1, x.astype(jnp.bfloat16), preferred_element_type=jnp.float32)
    h = h * bn[:, 0:1] + bn[:, 1:2]
    h = jnp.maximum(h, 0.0)

    # conv2 (1x1) + bn2 (folded)
    h = jnp.dot(w2, h.astype(jnp.bfloat16), preferred_element_type=jnp.float32)
    h = h * bn[:, 2:3] + bn[:, 3:4]

    # ----- Channel attention: shared MLP run once on stacked [avg | max] -----
    pooled_c = jnp.concatenate(
        [jnp.mean(h, axis=1, keepdims=True),
         jnp.max(h, axis=1, keepdims=True)], axis=1)                   # (C, 2)
    z = jnp.dot(wca1_ref[...], pooled_c.astype(jnp.bfloat16),
                preferred_element_type=jnp.float32)
    z = jnp.maximum(z, 0.0)                                            # (Cr, 2)
    y = jnp.dot(wca2_ref[...], z.astype(jnp.bfloat16),
                preferred_element_type=jnp.float32)                    # (C, 2)
    ca = jax.nn.sigmoid(y[:, 0:1] + y[:, 1:2])                         # (C, 1)
    h = h * ca

    # ----- Spatial attention: 7x7 (2->1, pad 3) conv as one Toeplitz matmul --
    # T (2*HW, HW) has the tap weights and the boundary masks baked in, so the
    # whole 49-tap stencil is a single (1, 2*HW) @ (2*HW, HW) MXU matmul.
    avg_s = jnp.mean(h, axis=0, keepdims=True)                         # (1, HW)
    max_s = jnp.max(h, axis=0, keepdims=True)                          # (1, HW)
    pooled_s = jnp.concatenate([avg_s, max_s], axis=1)                 # (1, 2HW)
    sa_logit = jnp.dot(pooled_s.astype(jnp.bfloat16), tsa_ref[...],
                       preferred_element_type=jnp.float32)             # (1, HW)
    sa = jax.nn.sigmoid(sa_logit)
    h = h * sa

    # residual add + relu
    o_ref[0] = jnp.maximum(h + x, 0.0)


# ----------------------------- Wrapper / glue ------------------------------ #
def _build_spatial_toeplitz(wsa, H, W):
    """Host-built (2*HW, HW) operator for the 7x7 (2->1, pad 3) conv.

    T[c*HW + p, q] = wsa[0, c, rp-rq+3, cp-cq+3] when |rp-rq|<=3 and |cp-cq|<=3,
    else 0 (zero padding / boundary masks baked in).
    """
    HW = H * W
    rows = np.repeat(np.arange(H, dtype=np.int32), W)                  # (HW,)
    cols = np.tile(np.arange(W, dtype=np.int32), H)                    # (HW,)
    dr = rows[:, None] - rows[None, :]                                 # rp - rq
    dc = cols[:, None] - cols[None, :]                                 # cp - cq
    valid = (np.abs(dr) <= KPAD) & (np.abs(dc) <= KPAD)
    kh = np.clip(dr + KPAD, 0, KSIZE - 1)
    kw = np.clip(dc + KPAD, 0, KSIZE - 1)
    w_np = np.asarray(wsa, dtype=np.float32).reshape(2, KSIZE, KSIZE)
    t_avg = np.where(valid, w_np[0][kh, kw], 0.0)                      # (HW, HW)
    t_max = np.where(valid, w_np[1][kh, kw], 0.0)                      # (HW, HW)
    T = np.concatenate([t_avg, t_max], axis=0)                         # (2HW, HW)
    return jnp.asarray(T, dtype=jnp.bfloat16)


def basic_block_forward(x_nchw, params):
    N, C, H, W = x_nchw.shape
    HW = H * W
    Cr = params["wca1"].shape[0]

    # NCHW -> (N, C, HW): free reshape (same memory layout), lane axis = HW
    x_flat = x_nchw.reshape(N, C, HW)

    # fold batchnorm params into scale/shift (inference mode)
    def fold(g, b, m, v):
        s = g / jnp.sqrt(v + EPS)
        return s, b - m * s

    s1, sh1 = fold(params["g1"], params["b1"], params["m1"], params["v1"])
    s2, sh2 = fold(params["g2"], params["b2"], params["m2"], params["v2"])
    bn_pack = jnp.stack([s1, sh1, s2, sh2], axis=1).astype(jnp.float32)  # (C,4)

    # pack the two 1x1 conv weights into one bf16 operand (MXU truncates to
    # bf16 at default precision anyway)
    w_conv = jnp.concatenate([params["w1"], params["w2"]],
                             axis=0).astype(jnp.bfloat16)                # (2C,C)
    wca1 = params["wca1"].astype(jnp.bfloat16)                           # (Cr,C)
    wca2 = params["wca2"].astype(jnp.bfloat16)                           # (C,Cr)

    # 7x7 spatial-attention conv as a masked Toeplitz operand (bf16, ~256 KB)
    t_sa = _build_spatial_toeplitz(params["wsa"], H, W)                  # (2HW,HW)

    def const_spec(shape):
        return pl.BlockSpec(shape, lambda n: (0,) * len(shape))

    out = pl.pallas_call(
        basic_block_kernel,
        out_shape=jax.ShapeDtypeStruct((N, C, HW), jnp.float32),
        grid_spec=pltpu.PrefetchScalarGridSpec(
            num_scalar_prefetch=0,
            grid=(N,),
            in_specs=[
                pl.BlockSpec((1, C, HW), lambda n: (n, 0, 0)),     # x
                const_spec((2 * C, C)),                            # conv1/conv2
                const_spec((C, 4)),                                # folded BN
                const_spec((Cr, C)),                               # CA MLP fc1
                const_spec((C, Cr)),                               # CA MLP fc2
                const_spec((2 * HW, HW)),                          # SA Toeplitz
            ],
            out_specs=pl.BlockSpec((1, C, HW), lambda n: (n, 0, 0)),
        ),
        compiler_params=pltpu.CompilerParams(
            dimension_semantics=("parallel",)),   # v7x: one batch elem per TC
    )(x_flat, w_conv, bn_pack, wca1, wca2, t_sa)

    # (N, C, HW) -> NCHW: free reshape
    return out.reshape(N, C, H, W)


# --------------------------- Pure-JAX reference ---------------------------- #
def reference_forward(x, p):
    hp = jax.lax.Precision.HIGHEST  # accurate reference; kernel uses MXU default

    def conv1x1(z, w):  # z: NCHW, w: (out, in)
        return jnp.einsum("oi,nihw->nohw", w, z, precision=hp)

    def bn(z, g, b, m, v):
        return ((z - m[None, :, None, None]) / jnp.sqrt(v[None, :, None, None] + EPS)
                * g[None, :, None, None] + b[None, :, None, None])

    out = jax.nn.relu(bn(conv1x1(x, p["w1"]), p["g1"], p["b1"], p["m1"], p["v1"]))
    out = bn(conv1x1(out, p["w2"]), p["g2"], p["b2"], p["m2"], p["v2"])

    # channel attention
    avg = jnp.mean(out, axis=(2, 3), keepdims=True)
    mx = jnp.max(out, axis=(2, 3), keepdims=True)

    def mlp(v):
        return conv1x1(jax.nn.relu(conv1x1(v, p["wca1"])), p["wca2"])

    out = jax.nn.sigmoid(mlp(avg) + mlp(mx)) * out

    # spatial attention
    avg_s = jnp.mean(out, axis=1, keepdims=True)
    max_s = jnp.max(out, axis=1, keepdims=True)
    cat = jnp.concatenate([avg_s, max_s], axis=1)
    sa = jax.lax.conv_general_dilated(
        cat, p["wsa"], window_strides=(1, 1), padding=((3, 3), (3, 3)),
        dimension_numbers=("NCHW", "OIHW", "NCHW"), precision=hp)
    out = jax.nn.sigmoid(sa) * out

    return jax.nn.relu(out + x)


# --------------------------------- Main ------------------------------------ #
if __name__ == "__main__":
    N, C, H, W = 2, 16, 16, 16   # inplanes = planes = 16, ratio = 4
    Cr = C // 4

    key = jax.random.PRNGKey(0)
    ks = jax.random.split(key, 16)

    params = {
        "w1":   jax.random.normal(ks[0], (C, C), jnp.float32) * 0.2,
        "g1":   1.0 + 0.1 * jax.random.normal(ks[1], (C,), jnp.float32),
        "b1":   0.1 * jax.random.normal(ks[2], (C,), jnp.float32),
        "m1":   0.1 * jax.random.normal(ks[3], (C,), jnp.float32),
        "v1":   1.0 + 0.1 * jnp.abs(jax.random.normal(ks[4], (C,), jnp.float32)),
        "w2":   jax.random.normal(ks[5], (C, C), jnp.float32) * 0.2,
        "g2":   1.0 + 0.1 * jax.random.normal(ks[6], (C,), jnp.float32),
        "b2":   0.1 * jax.random.normal(ks[7], (C,), jnp.float32),
        "m2":   0.1 * jax.random.normal(ks[8], (C,), jnp.float32),
        "v2":   1.0 + 0.1 * jnp.abs(jax.random.normal(ks[9], (C,), jnp.float32)),
        "wca1": jax.random.normal(ks[10], (Cr, C), jnp.float32) * 0.3,
        "wca2": jax.random.normal(ks[11], (C, Cr), jnp.float32) * 0.3,
        "wsa":  jax.random.normal(ks[12], (1, 2, 7, 7), jnp.float32) * 0.2,
    }

    x = jax.random.normal(ks[13], (N, C, H, W), jnp.float32)

    out = basic_block_forward(x, params)
    out = jax.block_until_ready(out)

    ref = jax.block_until_ready(reference_forward(x, params))
    # Kernel matmuls (conv, CA MLP, SA Toeplitz) run with bf16 operands and f32
    # accumulation; the reference is computed at HIGHEST precision, so use a
    # bf16-level tolerance here.
    np.testing.assert_allclose(np.asarray(out), np.asarray(ref),
                               rtol=2e-2, atol=5e-2)

    print("KERNEL_OK")
</pallas_src>

<mosaic_0001>
module attributes {stable_mosaic.version = 11 : i64} {
  func.func @basic_block_kernel(%arg0: i32, %arg1: memref<1x16x256xf32, #tpu.memory_space<vmem>>, %arg2: memref<32x16xbf16, #tpu.memory_space<vmem>>, %arg3: memref<16x4xf32, #tpu.memory_space<vmem>>, %arg4: memref<4x16xbf16, #tpu.memory_space<vmem>>, %arg5: memref<16x4xbf16, #tpu.memory_space<vmem>>, %arg6: memref<512x256xbf16, #tpu.memory_space<vmem>>, %arg7: memref<1x16x256xf32, #tpu.memory_space<vmem>>) attributes {dimension_semantics = [#tpu.dimension_semantics<parallel>], iteration_bounds = array<i64: 2>, scalar_prefetch = 0 : i64, scratch_operands = 0 : i64, tpu.core_type = #tpu.core_type<tc>, window_params = [{transform_indices = @transform_0, window_bounds = array<i64: 1, 16, 256>}, {pipeline_mode = #tpu.pipeline_mode<synchronous>, transform_indices = @transform_1, window_bounds = array<i64: 32, 16>}, {pipeline_mode = #tpu.pipeline_mode<synchronous>, transform_indices = @transform_2, window_bounds = array<i64: 16, 4>}, {pipeline_mode = #tpu.pipeline_mode<synchronous>, transform_indices = @transform_3, window_bounds = array<i64: 4, 16>}, {pipeline_mode = #tpu.pipeline_mode<synchronous>, transform_indices = @transform_4, window_bounds = array<i64: 16, 4>}, {pipeline_mode = #tpu.pipeline_mode<synchronous>, transform_indices = @transform_5, window_bounds = array<i64: 512, 256>}, {transform_indices = @transform_6, window_bounds = array<i64: 1, 16, 256>}]} {
    %c0 = arith.constant 0 : index
    %c0_0 = arith.constant 0 : index
    %c0_1 = arith.constant 0 : index
    %0 = vector.load %arg1[%c0, %c0_0, %c0_1] : memref<1x16x256xf32, #tpu.memory_space<vmem>>, vector<1x16x256xf32>
    %1 = vector.shape_cast %0 : vector<1x16x256xf32> to vector<16x256xf32>
    %c0_2 = arith.constant 0 : index
    %c0_3 = arith.constant 0 : index
    %2 = vector.load %arg2[%c0_2, %c0_3] : memref<32x16xbf16, #tpu.memory_space<vmem>>, vector<32x16xbf16>
    %3 = vector.extract_strided_slice %2 {offsets = [0, 0], sizes = [16, 16], strides = [1, 1]} : vector<32x16xbf16> to vector<16x16xbf16>
    %4 = vector.extract_strided_slice %2 {offsets = [16, 0], sizes = [16, 16], strides = [1, 1]} : vector<32x16xbf16> to vector<16x16xbf16>
    %c0_4 = arith.constant 0 : index
    %c0_5 = arith.constant 0 : index
    %5 = vector.load %arg3[%c0_4, %c0_5] : memref<16x4xf32, #tpu.memory_space<vmem>>, vector<16x4xf32>
    %6 = arith.truncf %1 : vector<16x256xf32> to vector<16x256xbf16>
    %cst = arith.constant dense<0.000000e+00> : vector<16x256xf32>
    %7 = tpu.matmul %3, %6, %cst {dimension_numbers = #tpu.dot_dimension_numbers<[1], [0], [0], [1], [0, 0, 1, 1], [], []>} : vector<16x16xbf16>, vector<16x256xbf16>, vector<16x256xf32> -> vector<16x256xf32>
    %8 = vector.extract_strided_slice %5 {offsets = [0, 0], sizes = [16, 1], strides = [1, 1]} : vector<16x4xf32> to vector<16x1xf32>
    %9 = vector.broadcast %8 : vector<16x1xf32> to vector<16x256xf32>
    %10 = arith.mulf %7, %9 : vector<16x256xf32>
    %11 = vector.extract_strided_slice %5 {offsets = [0, 1], sizes = [16, 1], strides = [1, 1]} : vector<16x4xf32> to vector<16x1xf32>
    %12 = vector.broadcast %11 : vector<16x1xf32> to vector<16x256xf32>
    %13 = arith.addf %10, %12 : vector<16x256xf32>
    %cst_6 = arith.constant 0.000000e+00 : f32
    %14 = vector.broadcast %cst_6 : f32 to vector<16x256xf32>
    %15 = arith.maximumf %13, %14 : vector<16x256xf32>
    %16 = arith.truncf %15 : vector<16x256xf32> to vector<16x256xbf16>
    %cst_7 = arith.constant dense<0.000000e+00> : vector<16x256xf32>
    %17 = tpu.matmul %4, %16, %cst_7 {dimension_numbers = #tpu.dot_dimension_numbers<[1], [0], [0], [1], [0, 0, 1, 1], [], []>} : vector<16x16xbf16>, vector<16x256xbf16>, vector<16x256xf32> -> vector<16x256xf32>
    %18 = vector.extract_strided_slice %5 {offsets = [0, 2], sizes = [16, 1], strides = [1, 1]} : vector<16x4xf32> to vector<16x1xf32>
    %19 = vector.broadcast %18 : vector<16x1xf32> to vector<16x256xf32>
    %20 = arith.mulf %17, %19 : vector<16x256xf32>
    %21 = vector.extract_strided_slice %5 {offsets = [0, 3], sizes = [16, 1], strides = [1, 1]} : vector<16x4xf32> to vector<16x1xf32>
    %22 = vector.broadcast %21 : vector<16x1xf32> to vector<16x256xf32>
    %23 = arith.addf %20, %22 : vector<16x256xf32>
    %cst_8 = arith.constant dense<0.000000e+00> : vector<16xf32>
    %24 = vector.multi_reduction <add>, %23, %cst_8 [1] : vector<16x256xf32> to vector<16xf32>
    %25 = vector.shape_cast %24 : vector<16xf32> to vector<16x1xf32>
    %cst_9 = arith.constant 2.560000e+02 : f32
    %26 = vector.broadcast %cst_9 : f32 to vector<16x1xf32>
    %27 = arith.divf %25, %26 : vector<16x1xf32>
    %cst_10 = arith.constant dense<0xFF800000> : vector<16xf32>
    %28 = vector.multi_reduction <maximumf>, %23, %cst_10 [1] : vector<16x256xf32> to vector<16xf32>
    %29 = vector.shape_cast %28 : vector<16xf32> to vector<16x1xf32>
    %30 = tpu.concatenate %27, %29 in 1 : vector<16x1xf32>, vector<16x1xf32> -> vector<16x2xf32>
    %c0_11 = arith.constant 0 : index
    %c0_12 = arith.constant 0 : index
    %31 = vector.load %arg4[%c0_11, %c0_12] : memref<4x16xbf16, #tpu.memory_space<vmem>>, vector<4x16xbf16>
    %32 = arith.truncf %30 : vector<16x2xf32> to vector<16x2xbf16>
    %cst_13 = arith.constant dense<0.000000e+00> : vector<4x2xf32>
    %33 = tpu.matmul %31, %32, %cst_13 {dimension_numbers = #tpu.dot_dimension_numbers<[1], [0], [0], [1], [0, 0, 1, 1], [], []>} : vector<4x16xbf16>, vector<16x2xbf16>, vector<4x2xf32> -> vector<4x2xf32>
    %cst_14 = arith.constant 0.000000e+00 : f32
    %34 = vector.broadcast %cst_14 : f32 to vector<4x2xf32>
    %35 = arith.maximumf %33, %34 : vector<4x2xf32>
    %c0_15 = arith.constant 0 : index
    %c0_16 = arith.constant 0 : index
    %36 = vector.load %arg5[%c0_15, %c0_16] : memref<16x4xbf16, #tpu.memory_space<vmem>>, vector<16x4xbf16>
    %37 = arith.truncf %35 : vector<4x2xf32> to vector<4x2xbf16>
    %cst_17 = arith.constant dense<0.000000e+00> : vector<16x2xf32>
    %38 = tpu.matmul %36, %37, %cst_17 {dimension_numbers = #tpu.dot_dimension_numbers<[1], [0], [0], [1], [0, 0, 1, 1], [], []>} : vector<16x4xbf16>, vector<4x2xbf16>, vector<16x2xf32> -> vector<16x2xf32>
    %39 = vector.extract_strided_slice %38 {offsets = [0, 0], sizes = [16, 1], strides = [1, 1]} : vector<16x2xf32> to vector<16x1xf32>
    %40 = vector.extract_strided_slice %38 {offsets = [0, 1], sizes = [16, 1], strides = [1, 1]} : vector<16x2xf32> to vector<16x1xf32>
    %41 = arith.addf %39, %40 : vector<16x1xf32>
    %42 = arith.negf %41 : vector<16x1xf32>
    %43 = math.exp %42 : vector<16x1xf32>
    %cst_18 = arith.constant 1.000000e+00 : f32
    %44 = vector.broadcast %cst_18 : f32 to vector<16x1xf32>
    %45 = arith.addf %44, %43 : vector<16x1xf32>
    %46 = arith.divf %44, %45 : vector<16x1xf32>
    %47 = vector.broadcast %46 : vector<16x1xf32> to vector<16x256xf32>
    %48 = arith.mulf %23, %47 : vector<16x256xf32>
    %cst_19 = arith.constant dense<0.000000e+00> : vector<256xf32>
    %49 = vector.multi_reduction <add>, %48, %cst_19 [0] : vector<16x256xf32> to vector<256xf32>
    %50 = vector.shape_cast %49 : vector<256xf32> to vector<1x256xf32>
    %cst_20 = arith.constant 1.600000e+01 : f32
    %51 = vector.broadcast %cst_20 : f32 to vector<1x256xf32>
    %52 = arith.divf %50, %51 : vector<1x256xf32>
    %cst_21 = arith.constant dense<0xFF800000> : vector<256xf32>
    %53 = vector.multi_reduction <maximumf>, %48, %cst_21 [0] : vector<16x256xf32> to vector<256xf32>
    %54 = vector.shape_cast %53 : vector<256xf32> to vector<1x256xf32>
    %55 = tpu.concatenate %52, %54 in 1 : vector<1x256xf32>, vector<1x256xf32> -> vector<1x512xf32>
    %56 = arith.truncf %55 : vector<1x512xf32> to vector<1x512xbf16>
    %c0_22 = arith.constant 0 : index
    %c0_23 = arith.constant 0 : index
    %57 = vector.load %arg6[%c0_22, %c0_23] : memref<512x256xbf16, #tpu.memory_space<vmem>>, vector<512x256xbf16>
    %cst_24 = arith.constant dense<0.000000e+00> : vector<1x256xf32>
    %58 = tpu.matmul %56, %57, %cst_24 {dimension_numbers = #tpu.dot_dimension_numbers<[1], [0], [0], [1], [0, 0, 1, 1], [], []>} : vector<1x512xbf16>, vector<512x256xbf16>, vector<1x256xf32> -> vector<1x256xf32>
    %59 = arith.negf %58 : vector<1x256xf32>
    %60 = math.exp %59 : vector<1x256xf32>
    %cst_25 = arith.constant 1.000000e+00 : f32
    %61 = vector.broadcast %cst_25 : f32 to vector<1x256xf32>
    %62 = arith.addf %61, %60 : vector<1x256xf32>
    %63 = arith.divf %61, %62 : vector<1x256xf32>
    %64 = vector.broadcast %63 : vector<1x256xf32> to vector<16x256xf32>
    %65 = arith.mulf %48, %64 : vector<16x256xf32>
    %66 = arith.addf %65, %1 : vector<16x256xf32>
    %cst_26 = arith.constant 0.000000e+00 : f32
    %67 = vector.broadcast %cst_26 : f32 to vector<16x256xf32>
    %68 = arith.maximumf %66, %67 : vector<16x256xf32>
    %c0_27 = arith.constant 0 : index
    %c0_28 = arith.constant 0 : index
    %c0_29 = arith.constant 0 : index
    %69 = vector.load %arg7[%c0_27, %c0_28, %c0_29] : memref<1x16x256xf32, #tpu.memory_space<vmem>>, vector<1x16x256xf32>
    %70 = vector.shape_cast %69 : vector<1x16x256xf32> to vector<16x256xf32>
    %71 = vector.shape_cast %68 : vector<16x256xf32> to vector<1x16x256xf32>
    tpu.vector_store %arg7[%c0_27, %c0_28, %c0_29], %71 {strides = array<i32>} : memref<1x16x256xf32, #tpu.memory_space<vmem>>, vector<1x16x256xf32>,
    return
  }
  func.func @transform_0(%arg0: i32) -> (i32, i32, i32) {
    %c0_i32 = arith.constant 0 : i32
    %c0_i32_0 = arith.constant 0 : i32
    %c0_i32_1 = arith.constant 0 : i32
    return %arg0, %c0_i32, %c0_i32_0 : i32, i32, i32
  }
  func.func @transform_1(%arg0: i32) -> (i32, i32) {
    %c0_i32 = arith.constant 0 : i32
    %c0_i32_0 = arith.constant 0 : i32
    %c0_i32_1 = arith.constant 0 : i32
    return %c0_i32, %c0_i32_0 : i32, i32
  }
  func.func @transform_2(%arg0: i32) -> (i32, i32) {
    %c0_i32 = arith.constant 0 : i32
    %c0_i32_0 = arith.constant 0 : i32
    %c0_i32_1 = arith.constant 0 : i32
    return %c0_i32, %c0_i32_0 : i32, i32
  }
  func.func @transform_3(%arg0: i32) -> (i32, i32) {
    %c0_i32 = arith.constant 0 : i32
    %c0_i32_0 = arith.constant 0 : i32
    %c0_i32_1 = arith.constant 0 : i32
    return %c0_i32, %c0_i32_0 : i32, i32
  }
  func.func @transform_4(%arg0: i32) -> (i32, i32) {
    %c0_i32 = arith.constant 0 : i32
    %c0_i32_0 = arith.constant 0 : i32
    %c0_i32_1 = arith.constant 0 : i32
    return %c0_i32, %c0_i32_0 : i32, i32
  }
  func.func @transform_5(%arg0: i32) -> (i32, i32) {
    %c0_i32 = arith.constant 0 : i32
    %c0_i32_0 = arith.constant 0 : i32
    %c0_i32_1 = arith.constant 0 : i32
    return %c0_i32, %c0_i32_0 : i32, i32
  }
  func.func @transform_6(%arg0: i32) -> (i32, i32, i32) {
    %c0_i32 = arith.constant 0 : i32
    %c0_i32_0 = arith.constant 0 : i32
    %c0_i32_1 = arith.constant 0 : i32
    return %arg0, %c0_i32, %c0_i32_0 : i32, i32, i32
  }
}

</mosaic_0001>

<bundles_post_ra>
// kernel: tpu_custom_call.1
= control target key start
LH: loop header
LB: loop body
LE: loop exit
PB: predicated region body
PF: predicated region fallthrough
CT: control target
= control target key end

     0   :  { %11 = vsyncpa [#allocation3], 0  ;;  %s2023_s0 = inlined_call_operand.hbm [shape: f32[2,16,256], index: 0, kind: input, shape index: {}]   ;;  %s2024_s1 = inlined_call_operand.vmem [shape: bf16[32,16], index: 1, kind: input, shape index: {}]   ;;  %s2025_s2 = inlined_call_operand.vmem [shape: f32[16,4], index: 2, kind: input, shape index: {}]   ;;  %s2026_s3 = inlined_call_operand.vmem [shape: bf16[4,16], index: 3, kind: input, shape index: {}]   ;;  %s2027_s4 = inlined_call_operand.vmem [shape: bf16[16,4], index: 4, kind: input, shape index: {}]   ;;  %s2028_s5 = inlined_call_operand.hbm [shape: bf16[512,256], index: 5, kind: input, shape index: {}]   ;;  %s2029_s6 = inlined_call_operand.hbm [shape: f32[2,16,256], index: 6, kind: output, shape index: {}]  }
   0x1   :  { %13 = vsyncpa [#allocation3 + $0x1], 0 }
   0x2   :  { %14 = vsyncpa [#allocation6], 0 }
   0x3   :  { %15 = vsyncpa [#allocation4], 0 }
   0x4   :  { %17 = vsyncpa [#allocation4 + $0x1], 0  ;;  %s1733_s21 = smov 0   ;;  %s1735_s22 = smov 0  }
   0x5   :  { %s1737_s23 = smov 0   ;;  %s1739_s24 = smov 0  }
   0x6 LB: > { %s1754_s25 = sadd.s32 4294967295, %s1680_s24   ;;  %s1248_s26 = sadd.s32 4294967294, %s1680_s24   ;;  %s1680_s24 = sphi %s1739_s24, %s2049_s24   ;;  %s1676_s23 = sphi %s1737_s23, %s2048_s23   ;;  %s1672_s22 = sphi %s1735_s22, %s2047_s22   ;;  %s1668_s21 = sphi %s1733_s21, %s2046_s21  }
   0x7   : > { %p43_p0 = scmp.ne.s32.totalorder %s1672_s22, %s1668_s21  ;;  %p2030_p1 = scmp.eq.s32.totalorder %s1754_s25, 0 }
   0x8   : > { %p178_p3 = scmp.eq.s32.totalorder %s1248_s26, 1  ;;  %p1249_p5 = scmp.ge.s32.totalorder %s1680_s24, 1 }
   0x9   : > { %p1763_p4 = por %p2030_p1, %p43_p0  ;;  %p185_p7 = scmp.lt.s32.totalorder %s1680_s24, 3 }
   0xa   : > { %p1768_p6 = por %p178_p3, %p43_p0  ;;  %s1682_s30 = smov [#allocation5]  }
   0xb   : > { %s2033_s27 = scalar_select %p1763_p4, 1, 0 }
   0xc   : > { %s2034_s28 = scalar_select %p1768_p6, 1, 0 }
   0xd   : > { %p1773_p8 = pnand %p1249_p5, %p185_p7  ;;  %s209_s7 = sshll.u32 %s1682_s30, 4  ;;  %s1777_s7 = int_to_ptr.vmem [resolvable:$true] %s209_s7 }
   0xe   : > { %s1789_s9 = sadd.s32 1, %s1680_s24   ;;  %s30_s10 = sadd.s32 1, %s1676_s23 }
   0xf   : > { %s2035_s29 = scalar_select %p1773_p8, 1, 0 }
  0x10   : > { %p1367_p9 = pneg %p1773_p8  ;;  %s27_s11 = ssub.s32 %s1680_s24, %s1789_s9 }
  0x11   : > { %s1552_s14 = scalar_lea.hbm %s2028_s5, 8192 }
  0x12   : > { %p1784_p11 = pnand %p1367_p9, %p2030_p1  ;;  %p1553_p12 = scmp.ne.s32.totalorder %s2028_s5, %s1552_s14 }
  0x13   : > { %p1559_p5 = scmp.lt.u32.totalorder %s1552_s14, %s2028_s5 }
  0x14   : > { %p1554_p13 = pneg %p1784_p11 }
  0x16   : > { %p1555_p0 = pnand %p1554_p13, %p1553_p12 }
  0x18   : > { %p1556_p3 = pneg %p1555_p0 }
  0x1a   : > { %p1561_p7 = pnand %p1559_p5, %p1556_p3 }
  0x1c   : > { %1564 = shalt.err (!%p1561_p7)
}
  0x1d   : > { %s1565_s19 = scalar_lea.vmem %s1777_s7, 8192  ;;  %p1573_p2 = scmp.lt.s32.totalorder %s1777_s7, %s1777_s7 }
  0x1e   : > { %p1566_p9 = scmp.ne.s32.totalorder %s1777_s7, %s1565_s19  ;;  %p1574_p6 = scmp.lt.s32.totalorder %s1565_s19, %s1565_s19 }
  0x20   : > { %p1568_p10 = pnand %p1566_p9, %p1554_p13  ;;  %p1575_p4 = por %p1574_p6, %p1573_p2 }
  0x22   : > { %p1569_p1 = pneg %p1568_p10 }
  0x24   : > { %p1576_p8 = pnand %p1575_p4, %p1569_p1 }
  0x26   : > { %1579 = shalt.err (!%p1576_p8)
}
  0x27   : > { %s1683_s20 = smov 128   ;;  %s1684_s26 = smov 8  }
  0x28   : > { %1370 = dma.hbm_to_vmem [thread:$0]  (!%p1784_p11), %s2028_s5, 8192, %s1777_s7, [#allocation6], %s1683_s20, %s1683_s20, %s1684_s26  }
  0x29   : > { %p28_p2 = scmp.eq.s32.totalorder %s27_s11, 0  ;;  %p37_p1 = scmp.ne.s32.totalorder %s1676_s23, %s1672_s22 }
  0x2a   : > { %p38_p4 = scmp.eq.s32.totalorder %s1680_s24, 0  ;;  %p1380_p6 = scmp.lt.s32.totalorder %s1680_s24, 2 }
  0x2b   : > { %s1820_s13 = scalar_select %p28_p2, %s1676_s23, %s30_s10  }
  0x2c   : > { %p39_p8 = por %p38_p4, %p37_p1  ;;  %p2037_p10 = scmp.eq.s32.totalorder %s1754_s25, 1 }
  0x2d   : > { %s223_s15 = sand.u32 1, %s1676_s23   ;;  %s1339_s16 = sshll.u32 %s1680_s24, 9 }
  0x2e   : > { %p1824_p12 = por %p2037_p10, %p37_p1  ;;  %s1252_s17 = sshll.u32 %s223_s15, 5 }
  0x2f   : > { %s1833_s19 = scalar_lea.hbm %s2023_s0, %s1339_s16  ;;  %s227_s7 = scalar_lea.vmem [#allocation2], %s1252_s17 }
  0x30   : > { %s234_s10 = sshll.u32 %s227_s7, 4  ;;  %p1835_p11 = pnand %p1380_p6, %p39_p8  ;;  %s1839_s10 = int_to_ptr.vmem [resolvable:$true] %s234_s10 }
  0x31   : > { %s1841_s20 = scalar_lea.sflag [#allocation3], %s223_s15  ;;  %s1580_s26 = scalar_lea.hbm %s1833_s19, 512 }
  0x32   : > { %p1581_p13 = scmp.ne.s32.totalorder %s1833_s19, %s1580_s26  ;;  %p1582_p0 = pneg %p1835_p11 }
  0x33   : > { %s1585_s16 = scalar_lea.hbm %s2023_s0, 1024  ;;  %p1586_p7 = scmp.lt.u32.totalorder %s1833_s19, %s2023_s0 }
  0x34   : > { %p1583_p3 = pnand %p1582_p0, %p1581_p13  ;;  %p1587_p9 = scmp.lt.u32.totalorder %s1585_s16, %s1580_s26 }
  0x35   : > { %p1589_p1 = scmp.lt.u32.totalorder %s1580_s26, %s1833_s19 }
  0x36   : > { %p1584_p5 = pneg %p1583_p3  ;;  %p1588_p2 = por %p1587_p9, %p1586_p7 }
  0x38   : > { %p1590_p4 = por %p1589_p1, %p1588_p2 }
  0x3a   : > { %p1591_p6 = pnand %p1590_p4, %p1584_p5 }
  0x3c   : > { %1594 = shalt.err (!%p1591_p6)
}
  0x3d   : > { %s1595_s15 = scalar_lea.vmem %s1839_s10, 512  ;;  %s1685_s18 = smov [#allocation2]  }
  0x3e   : > { %p1596_p8 = scmp.ne.s32.totalorder %s1839_s10, %s1595_s15  ;;  %s1600_s7 = sshll.u32 %s1685_s18, 4  ;;  %s1601_s7 = int_to_ptr.vmem [resolvable:$false] %s1600_s7 }
  0x3f   : > { %s1602_s30 = scalar_lea.vmem %s1601_s7, 1024  ;;  %p1603_p3 = scmp.lt.s32.totalorder %s1839_s10, %s1601_s7 }
  0x40   : > { %p1598_p10 = pnand %p1596_p8, %p1582_p0  ;;  %p1604_p7 = scmp.lt.s32.totalorder %s1602_s30, %s1595_s15 }
  0x42   : > { %p1599_p13 = pneg %p1598_p10  ;;  %p1605_p9 = por %p1604_p7, %p1603_p3 }
  0x44   : > { %p1606_p2 = pnand %p1605_p9, %p1599_p13 }
  0x46   : > { %1609 = shalt.err (!%p1606_p2)
}
  0x47   : > { %s1686_s26 = smov 256   ;;  %s1687_s12 = smov 16  }
  0x48   : > { %1374 = dma.hbm_to_vmem [thread:$0]  (!%p1835_p11), %s1833_s19, 512, %s1839_s10, %s1841_s20, %s1686_s26, %s1686_s26, %s1687_s12  }
  0x49   : > { %p2040_p0 = scmp.ne.s32.totalorder %s2035_s29, 0 }
  0x4a   : > { %s1872_s16 = sand.u32 (!%p2040_p0), 1, %s1672_s22   ;;  %p2041_p5 = scmp.ne.s32.totalorder (!%p2040_p0), %s2033_s27, 0 }
  0x4b   : > { %246 = sbr.rel (%p2040_p0) target bundleno = 1685 (0x695), region = 44  ;;  %s1256_s17 = sshll.u32 (!%p2040_p0), %s1872_s16, 5 }
  0x4c   : > { %s249_s8 = scalar_lea.sflag (!%p2040_p0), [#allocation3], %s1872_s16  ;;  %s252_s15 = scalar_lea.vmem (!%p2040_p0), [#allocation2], %s1256_s17 }
  0x52   : > { %1655 = dma.done.wait (%p2041_p5), %s249_s8, 512  }
  0x53   : > { %1657 = vsyncadd (%p2041_p5), %s249_s8, 4294966784  ;;  %p2042_p11 = scmp.eq.s32.totalorder %s1754_s25, 0 }
  0x55   : > { %1659 = dma.done.wait (%p2042_p11), [#allocation6], 8192   ;;  %p2043_p1 = pmov %p2042_p11 }
  0x56   : > { %v1688_v0 = vmov 0   ;;  %v1689_v1 = vmov 1   ;;  %v1886_v2 = vld [vmem:[%s252_s15 + $0x8] sm:$0xff]  ;;  %v1888_v3 = vld [vmem:[%s252_s15 + $0x18] sm:$0xff]  ;;  %v1890_v4 = vld [vmem:[%s252_s15] sm:$0xff]  ;;  %vm303_vm0 = vcmask 130048  }
  0x57   : > { %1661 = vsyncadd (%p2043_p1), [#allocation6], 4294959104  ;;  %339 = vmatprep.mubr.bf16.mxu0 %v1688_v0  ;;  %1429 = vset.pattern.permute.xlu0 %v1688_v0  ;;  %v297_v5 = vpack.c.bf16 %v1888_v3, %v1886_v2  ;;  %v1894_v6 = vld [vmem:[%s252_s15 + $0x10] sm:$0xff]  ;;  %v1437_v8 = vld [vmem:[%s2024_s1] sm:$0xff]   ;;  %v1690_v11 = vmov 2   ;;  %v1691_v12 = vmov 3  }
  0x58   : > { %1430 = vset.pattern.permute.xlu1 %v1689_v1  ;;  %422 = vmatprep.mubr.bf16.mxu1 %v1688_v0  ;;  %v296_v7 = vpack.c.bf16 %v1894_v6, %v1890_v4  ;;  %v294_v9 = vld [vmem:[%s2025_s2] sm:$0xff]  ;;  %v295_v10 = vld [vmem:[%s2025_s2 + $0x8] sm:$0xff]  ;;  %v1692_v56 = vmov 0.0   ;;  %vm1693_vm1 = vmmov 0   ;;  %vm472_vm2 = vcmask 7168   ;;  %s1694_s15 = smov 127  }
  0x59   : > { %307 = vmatprep.subr.bf16.mxu0 %v297_v5  ;;  %352 = vperm.xlu0 %1429, %v294_v9   ;;  %v1438_v35 = vld [vmem:[%s2024_s1 + $0x8] sm:$0xff]   ;;  %v475_v5 = vld [vmem:[%s2026_s3] sm:$0x3]  ;;  %vm533_vm3 = vcmask 1041408   ;;  %vm529_vm4 = vcmask 31744   ;;  %s1340_s27 = sshll.u32 %s1754_s25, 9 }
  0x5a   : > { %308 = vmatpush1.bf16.msra.mxu0 %v296_v7  ;;  %365 = vperm.xlu1 %1430, %v294_v9   ;;  %s284_s29 = scalar_lea.vmem [#allocation7], %s1256_s17  ;;  %s1977_s20 = scalar_lea.hbm %s2029_s6, %s1340_s27 }
  0x5b   : > { %1345 = vmatprep.subr.bf16.mxu0 %v1692_v56  ;;  %s1165_s19 = sshll.u32 %s284_s29, 4  ;;  %s1152_s25 = scalar_lea.sflag [#allocation4], %s1872_s16  ;;  %s1979_s19 = int_to_ptr.vmem [resolvable:$true] %s1165_s19 }
  0x5c   : > { %s1610_s17 = scalar_lea.vmem %s1979_s19, 512  ;;  %s1695_s18 = smov [#allocation7]  }
  0x5d   : > { %1260 = vmatmul.mubr.msk.bf16.vlgmr.msra.gmra.mrb[0].mxu0 %vm303_vm0, %v1437_v8  ;;  %357 = vperm.xlu0 %1429, %v295_v10   ;;  %p1611_p4 = scmp.ne.s32.totalorder %s1979_s19, %s1610_s17  ;;  %s1614_s7 = sshll.u32 %s1695_s18, 4  ;;  %s1615_s7 = int_to_ptr.vmem [resolvable:$false] %s1614_s7 }
  0x5e   : > { %369 = vperm.xlu1 %1430, %v295_v10   ;;  %1347 = vmatprep.mubr.msk.bf16.mxu0 %vm1693_vm1, %v1692_v56  ;;  %s1616_s30 = scalar_lea.vmem %s1615_s7, 1024  ;;  %p1617_p10 = scmp.lt.s32.totalorder %s1979_s19, %s1615_s7 }
  0x5f   : > { %p1612_p6 = pnand %p1611_p4, %p1824_p12  ;;  %p1618_p13 = scmp.lt.s32.totalorder %s1616_s30, %s1610_s17 }
  0x61   : > { %1431 = vset.pattern.permute.xlu0 %v1690_v11  ;;  %p1613_p8 = pneg %p1612_p6  ;;  %p1619_p3 = por %p1618_p13, %p1617_p10 }
  0x62   : > { %1432 = vset.pattern.permute.xlu1 %v1690_v11  ;;  %434 = vperm.xlu0 %1431, %v294_v9  }
  0x63   : > { %438 = vperm.xlu1 %1432, %v295_v10   ;;  %p1620_p7 = pnand %p1619_p3, %p1613_p8 }
  0x66   : > { %1434 = vset.pattern.permute.xlu0 %v1691_v12 }
  0x67   : > { %1433 = vset.pattern.permute.xlu1 %v1691_v12  ;;  %450 = vperm.xlu0 %1434, %v295_v10  }
  0x68   : > { %446 = vperm.xlu1 %1433, %v294_v9  }
  0x6b   : > { %1436 = vset.pattern.permute.xlu0 %v1688_v0 }
  0x6c   : > { %1435 = vset.pattern.permute.xlu1 %v1688_v0 }
  0xd8   : > { %v353_v13 = vpop.permute.xlu0 %352 }
  0xd9   : > { %v366_v14 = vpop.permute.xlu1 %365 }
  0xdc   : > { %v358_v18 = vpop.permute.xlu0 %357 }
  0xdd   : > { %v370_v24 = vpop.permute.xlu1 %369 }
  0xe1   : > { %v435_v37 = vpop.permute.xlu0 %434 }
  0xe2   : > { %v439_v36 = vpop.permute.xlu1 %438 }
  0xe6   : > { %v451_v44 = vpop.permute.xlu0 %450 }
  0xe7   : > { %v447_v39 = vpop.permute.xlu1 %446 }
 0x130   : > { %v341_v15 = vpop.f32.mrb[0].mxu0 }
 0x131   : > { %v360_v16 = vmul.f32 %v353_v13, %v341_v15  ;;  %v343_v17 = vpop.f32.mrb[1].mxu0 }
 0x132   : > { %v361_v19 = vmul.f32 %v353_v13, %v343_v17  ;;  %v345_v20 = vpop.f32.mrb[2].mxu0 }
 0x133   : > { %v372_v21 = vadd.f32 %v366_v14, %v360_v16  ;;  %v362_v22 = vmul.f32 %v358_v18, %v345_v20  ;;  %v347_v23 = vpop.f32.mrb[3].mxu0  ;;  %v1442_v20 = vld [vmem:[#allocation5 + $0x104] ss:$8 sps:$4 sm:$0xff]  }
 0x134   : > { %v363_v25 = vmul.f32 %v358_v18, %v347_v23  ;;  %v373_v26 = vadd.f32 %v366_v14, %v361_v19  ;;  %v1439_v14 = vld [vmem:[%s2027_s4] sm:$0xff]   ;;  %v1448_v23 = vld [vmem:[#allocation5 + $0x114] ss:$8 sps:$4 sm:$0xff]  }
 0x135   : > { %v374_v27 = vadd.f32 %v370_v24, %v362_v22  ;;  %v376_v29 = vmax.f32 %v372_v21, 0.0  ;;  %v1440_v19 = vld [vmem:[#allocation5 + $0x100] ss:$8 sps:$4 sm:$0xff]   ;;  %v1445_v22 = vld [vmem:[#allocation5 + $0x4] ss:$8 sps:$4 sm:$0xff]  }
 0x136   : > { %v375_v28 = vadd.f32 %v370_v24, %v363_v25  ;;  %v377_v31 = vmax.f32 %v373_v26, 0.0  ;;  %v1443_v21 = vld [vmem:[#allocation5] ss:$8 sps:$4 sm:$0xff]   ;;  %v1451_v24 = vld [vmem:[#allocation5 + $0x14] ss:$8 sps:$4 sm:$0xff]  }
 0x137   : > { %v378_v30 = vmax.f32 %v374_v27, 0.0  ;;  %v1446_v25 = vld [vmem:[#allocation5 + $0x110] ss:$8 sps:$4 sm:$0xff]   ;;  %v1454_v27 = vld [vmem:[#allocation5 + $0x124] ss:$8 sps:$4 sm:$0xff]  }
 0x138   : > { %v379_v32 = vmax.f32 %v375_v28, 0.0  ;;  %v1449_v26 = vld [vmem:[#allocation5 + $0x10] ss:$8 sps:$4 sm:$0xff]   ;;  %v1457_v28 = vld [vmem:[#allocation5 + $0x24] ss:$8 sps:$4 sm:$0xff]  }
 0x139   : > { %v380_v33 = vpack.c.bf16 %v378_v30, %v376_v29  ;;  %v1452_v29 = vld [vmem:[#allocation5 + $0x120] ss:$8 sps:$4 sm:$0xff]  }
 0x13a   : > { %v381_v34 = vpack.c.bf16 %v379_v32, %v377_v31  ;;  %v1455_v30 = vld [vmem:[#allocation5 + $0x20] ss:$8 sps:$4 sm:$0xff]   ;;  %v1460_v31 = vld [vmem:[#allocation5 + $0x134] ss:$8 sps:$4 sm:$0xff]  }
 0x13b   : > { %v1463_v32 = vld [vmem:[#allocation5 + $0x34] ss:$8 sps:$4 sm:$0xff]  }
 0x13c   : > { %390 = vmatprep.subr.bf16.mxu1 %v381_v34  ;;  %v1461_v34 = vld [vmem:[#allocation5 + $0x30] ss:$8 sps:$4 sm:$0xff]  }
 0x13d   : > { %391 = vmatpush1.bf16.msra.mxu1 %v380_v33  ;;  %v1458_v33 = vld [vmem:[#allocation5 + $0x130] ss:$8 sps:$4 sm:$0xff]  }
 0x13e   : > { %1351 = vmatprep.subr.bf16.mxu1 %v1692_v56 }
 0x140   : > { %1262 = vmatmul.mubr.msk.bf16.vlgmr.msra.gmra.mrb[0].mxu1 %vm303_vm0, %v1438_v35  ;;  %v1466_v35 = vld [vmem:[#allocation5 + $0x144] ss:$8 sps:$4 sm:$0xff]  }
 0x141   : > { %1353 = vmatprep.mubr.msk.bf16.mxu1 %vm1693_vm1, %v1692_v56  ;;  %v1493_v56 = vld [vmem:[#allocation5 + $0x84] ss:$8 sps:$4 sm:$0xff]  }
 0x213   : > { %v424_v38 = vpop.f32.mrb[0].mxu1 }
 0x214   : > { %v441_v40 = vmul.f32 %v435_v37, %v424_v38  ;;  %v426_v41 = vpop.f32.mrb[1].mxu1  ;;  %v1467_v38 = vld [vmem:[#allocation5 + $0x40] ss:$8 sps:$4 sm:$0xff]  }
 0x215   : > { %v442_v42 = vmul.f32 %v435_v37, %v426_v41  ;;  %v428_v43 = vpop.f32.mrb[2].mxu1  ;;  %v1464_v37 = vld [vmem:[#allocation5 + $0x140] ss:$8 sps:$4 sm:$0xff]   ;;  %v1470_v41 = vld [vmem:[#allocation5 + $0x150] ss:$8 sps:$4 sm:$0xff]  }
 0x216   : > { %v1912_v45 = vadd.f32 %v447_v39, %v441_v40  ;;  %v443_v46 = vmul.f32 %v439_v36, %v428_v43  ;;  %v430_v47 = vpop.f32.mrb[3].mxu1  ;;  %v1475_v40 = vld [vmem:[#allocation5 + $0x54] ss:$8 sps:$4 sm:$0xff]   ;;  %v1478_v43 = vld [vmem:[#allocation5 + $0x164] ss:$8 sps:$4 sm:$0xff]  }
 0x217   : > { %v1914_v48 = vadd.f32 %v447_v39, %v442_v42  ;;  %v444_v49 = vmul.f32 %v439_v36, %v430_v47  ;;  %v1469_v36 = vld [vmem:[#allocation5 + $0x44] ss:$8 sps:$4 sm:$0xff]   ;;  %v1472_v39 = vld [vmem:[#allocation5 + $0x154] ss:$8 sps:$4 sm:$0xff]   ;;  %v1473_v42 = vld [vmem:[#allocation5 + $0x50] ss:$8 sps:$4 sm:$0xff]  }
 0x218   : > { %v1916_v50 = vadd.f32 %v451_v44, %v443_v46  ;;  %v1476_v46 = vld [vmem:[#allocation5 + $0x160] ss:$8 sps:$4 sm:$0xff]  }
 0x219   : > { %v1918_v51 = vadd.f32 %v451_v44, %v444_v49  ;;  %v457_v52 = vadd.f32 %v1914_v48, %v1912_v45  ;;  %v466_v54 = vmax.f32 %v1912_v45, %v1914_v48  ;;  %v1481_v44 = vld [vmem:[#allocation5 + $0x64] ss:$8 sps:$4 sm:$0xff]   ;;  %v1479_v47 = vld [vmem:[#allocation5 + $0x60] ss:$8 sps:$4 sm:$0xff]   ;;  %v1484_v49 = vld [vmem:[#allocation5 + $0x174] ss:$8 sps:$4 sm:$0xff]  }
 0x21b   : > { %458 = vadd.xlane.f32.xlu1 %v457_v52  ;;  %v460_v53 = vadd.f32 %v1918_v51, %v1916_v50  ;;  %v469_v55 = vmax.f32 %v1916_v50, %v1918_v51  ;;  %v1487_v52 = vld [vmem:[#allocation5 + $0x74] ss:$8 sps:$4 sm:$0xff]  }
 0x21d   : > { %461 = vadd.xlane.f32.xlu0 %v460_v53  ;;  %v1482_v53 = vld [vmem:[#allocation5 + $0x170] ss:$8 sps:$4 sm:$0xff]  }
 0x21f   : > { %467 = vmax.xlane.f32.xlu1 %v466_v54  ;;  %v1485_v54 = vld [vmem:[#allocation5 + $0x70] ss:$8 sps:$4 sm:$0xff]  }
 0x221   : > { %470 = vmax.xlane.f32.xlu0 %v469_v55  ;;  %v1490_v55 = vld [vmem:[#allocation5 + $0x184] ss:$8 sps:$4 sm:$0xff]  }
 0x2a8   : > { %v459_v57 = vpop.xlane.xlu1 %458 }
 0x2a9   : > { %v464_v60 = vmul.f32 0.00390625, %v459_v57  ;;  %v1488_v57 = vld [vmem:[#allocation5 + $0x180] ss:$8 sps:$4 sm:$0xff]  }
 0x2aa   : > { %v462_v58 = vpop.xlane.xlu0 %461 }
 0x2ab   : > { %v465_v61 = vmul.f32 0.00390625, %v462_v58  ;;  %v1491_v58 = vld [vmem:[#allocation5 + $0x80] ss:$8 sps:$4 sm:$0xff]  }
 0x2ac   : > { %v468_v59 = vpop.xlane.xlu1 %467 }
 0x2ad   : > { %v473_v63 = vsel %vm472_vm2, %v464_v60, %v468_v59  ;;  %v1496_v59 = vld [vmem:[#allocation5 + $0x194] ss:$8 sps:$4 sm:$0xff]  }
 0x2ae   : > { %v471_v62 = vpop.xlane.xlu0 %470  ;;  %v1499_v60 = vld [vmem:[#allocation5 + $0x94] ss:$8 sps:$4 sm:$0xff]  }
 0x2af   : > { %v474_v0 = vsel %vm472_vm2, %v465_v61, %v471_v62  ;;  %v1494_v61 = vld [vmem:[#allocation5 + $0x190] ss:$8 sps:$4 sm:$0xff]  }
 0x2b0   : > { %v476_v1 = vpack.c.bf16 %v474_v0, %v473_v63  ;;  %v1497_v62 = vld [vmem:[#allocation5 + $0x90] ss:$8 sps:$4 sm:$0xff]   ;;  %v1502_v63 = vld [vmem:[#allocation5 + $0x1a4] ss:$8 sps:$4 sm:$0xff]   ;;  %v1500_v0 = vld [vmem:[#allocation5 + $0x1a0] ss:$8 sps:$4 sm:$0xff]  }
 0x2b2   : > { %1346 = vmatpush3.bf16.msra.mxu0 %v476_v1 }
 0x2b3   : > { %1074 = vmatprep.subr.bf16.mxu0 %v1442_v20  ;;  %v1506_v20 = vld [vmem:[#allocation5 + $0x1b0] ss:$8 sps:$4 sm:$0xff]  }
 0x2b5   : > { %1348 = vmatmul.mubr.msk.bf16.vlgmr.msra.gmra.mrb[4].mxu0 %vm303_vm0, %v475_v5 }
 0x2b6   : > { %1075 = vmatpush1.bf16.msra.mxu0 %v1440_v19  ;;  %v1503_v19 = vld [vmem:[#allocation5 + $0xa0] ss:$8 sps:$4 sm:$0xff]  }
 0x2b7   : > { %1076 = vmatprep.subr.bf16.mxu0 %v1448_v23  ;;  %v1514_v23 = vld [vmem:[#allocation5 + $0x1c4] ss:$8 sps:$4 sm:$0xff]  }
 0x2ba   : > { %1077 = vmatpush1.bf16.msra.mxu0 %v1446_v25  ;;  %v1517_v25 = vld [vmem:[#allocation5 + $0xc4] ss:$8 sps:$4 sm:$0xff]  }
 0x2bb   : > { %1078 = vmatprep.subr.bf16.mxu0 %v1454_v27  ;;  %v1520_v27 = vld [vmem:[#allocation5 + $0x1d4] ss:$8 sps:$4 sm:$0xff]  }
 0x2be   : > { %1079 = vmatpush1.bf16.msra.mxu0 %v1452_v29  ;;  %v1523_v29 = vld [vmem:[#allocation5 + $0xd4] ss:$8 sps:$4 sm:$0xff]  }
 0x2bf   : > { %1080 = vmatprep.subr.bf16.mxu0 %v1460_v31  ;;  %v1526_v31 = vld [vmem:[#allocation5 + $0x1e4] ss:$8 sps:$4 sm:$0xff]  }
 0x2c2   : > { %1081 = vmatpush1.bf16.msra.mxu0 %v1458_v33  ;;  %v1527_v33 = vld [vmem:[#allocation5 + $0xe0] ss:$8 sps:$4 sm:$0xff]  }
 0x2c3   : > { %1082 = vmatprep.subr.bf16.mxu0 %v1466_v35  ;;  %v1532_v35 = vld [vmem:[#allocation5 + $0x1f4] ss:$8 sps:$4 sm:$0xff]  }
 0x2c6   : > { %1083 = vmatpush1.bf16.msra.mxu0 %v1464_v37  ;;  %v1535_v37 = vld [vmem:[#allocation5 + $0xf4] ss:$8 sps:$4 sm:$0xff]  }
 0x2c7   : > { %1084 = vmatprep.subr.bf16.mxu0 %v1472_v39 }
 0x2ca   : > { %1085 = vmatpush1.bf16.msra.mxu0 %v1470_v41 }
 0x2cb   : > { %1086 = vmatprep.subr.bf16.mxu0 %v1478_v43 }
 0x2ce   : > { %1087 = vmatpush1.bf16.msra.mxu0 %v1476_v46 }
 0x2cf   : > { %1088 = vmatprep.subr.bf16.mxu0 %v1484_v49 }
 0x2d2   : > { %1089 = vmatpush1.bf16.msra.mxu0 %v1482_v53 }
 0x2d3   : > { %1090 = vmatprep.subr.bf16.mxu0 %v1490_v55 }
 0x2d6   : > { %1091 = vmatpush1.bf16.msra.mxu0 %v1488_v57 }
 0x2d7   : > { %1092 = vmatprep.subr.bf16.mxu0 %v1496_v59 }
 0x2da   : > { %1093 = vmatpush1.bf16.msra.mxu0 %v1494_v61 }
 0x2db   : > { %1094 = vmatprep.subr.bf16.mxu0 %v1502_v63 }
 0x2de   : > { %1095 = vmatpush1.bf16.msra.mxu0 %v1500_v0 }
 0x388   : > { %v514_v7 = vpop.f32.mrb[4].mxu0 }
 0x389   : > { %v520_v8 = vmax.f32 %v514_v7, 0.0  ;;  %v1349_v9 = vpop.f32.mrb[5].mxu0 }
 0x38a   : > { %v517_v10 = vpop.f32.mrb[6].mxu0 }
 0x38b   : > { %v523_v11 = vpack.c.bf16 %v520_v8, %v520_v8  ;;  %v1350_v12 = vpop.f32.mrb[7].mxu0 }
 0x38d   : > { %v535_v13 = vsel %vm533_vm3, %v523_v11, 0 }
 0x38e   : > { %1352 = vmatpush3.bf16.msra.mxu1 %v535_v13 }
 0x38f   : > { %1033 = vmatprep.subr.bf16.mxu1 %v1445_v22  ;;  %v1509_v22 = vld [vmem:[#allocation5 + $0xb0] ss:$8 sps:$4 sm:$0xff]  }
 0x391   : > { %1354 = vmatmul.mubr.msk.bf16.vlgmr.msra.gmra.mrb[4].mxu1 %vm529_vm4, %v1439_v14 }
 0x392   : > { %1034 = vmatpush1.bf16.msra.mxu1 %v1443_v21  ;;  %v1508_v21 = vld [vmem:[#allocation5 + $0x1b4] ss:$8 sps:$4 sm:$0xff]  }
 0x393   : > { %1035 = vmatprep.subr.bf16.mxu1 %v1451_v24  ;;  %1096 = vmatprep.subr.bf16.mxu0 %v1508_v21  ;;  %v1512_v24 = vld [vmem:[#allocation5 + $0x1c0] ss:$8 sps:$4 sm:$0xff]  }
 0x394   : > { %1097 = vmatpush1.bf16.msra.mxu0 %v1506_v20 }
 0x395   : > { %1098 = vmatprep.subr.bf16.mxu0 %v1514_v23 }
 0x396   : > { %1036 = vmatpush1.bf16.msra.mxu1 %v1449_v26  ;;  %v1515_v26 = vld [vmem:[#allocation5 + $0xc0] ss:$8 sps:$4 sm:$0xff]  }
 0x397   : > { %1037 = vmatprep.subr.bf16.mxu1 %v1457_v28  ;;  %v1518_v28 = vld [vmem:[#allocation5 + $0x1d0] ss:$8 sps:$4 sm:$0xff]  }
 0x398   : > { %1099 = vmatpush1.bf16.msra.mxu0 %v1512_v24 }
 0x399   : > { %1100 = vmatprep.subr.bf16.mxu0 %v1520_v27 }
 0x39a   : > { %1038 = vmatpush1.bf16.msra.mxu1 %v1455_v30  ;;  %v1521_v30 = vld [vmem:[#allocation5 + $0xd0] ss:$8 sps:$4 sm:$0xff]  }
 0x39b   : > { %1039 = vmatprep.subr.bf16.mxu1 %v1463_v32  ;;  %v1524_v32 = vld [vmem:[#allocation5 + $0x1e0] ss:$8 sps:$4 sm:$0xff]  }
 0x39c   : > { %1101 = vmatpush1.bf16.msra.mxu0 %v1518_v28 }
 0x39d   : > { %1102 = vmatprep.subr.bf16.mxu0 %v1526_v31 }
 0x39e   : > { %1040 = vmatpush1.bf16.msra.mxu1 %v1461_v34  ;;  %v1529_v34 = vld [vmem:[#allocation5 + $0xe4] ss:$8 sps:$4 sm:$0xff]  }
 0x39f   : > { %1041 = vmatprep.subr.bf16.mxu1 %v1469_v36  ;;  %v1530_v36 = vld [vmem:[#allocation5 + $0x1f0] ss:$8 sps:$4 sm:$0xff]  }
 0x3a0   : > { %1103 = vmatpush1.bf16.msra.mxu0 %v1524_v32 }
 0x3a1   : > { %1104 = vmatprep.subr.bf16.mxu0 %v1532_v35 }
 0x3a2   : > { %1042 = vmatpush1.bf16.msra.mxu1 %v1467_v38  ;;  %v1533_v38 = vld [vmem:[#allocation5 + $0xf0] ss:$8 sps:$4 sm:$0xff]  }
 0x3a3   : > { %1043 = vmatprep.subr.bf16.mxu1 %v1475_v40 }
 0x3a4   : > { %1105 = vmatpush1.bf16.msra.mxu0 %v1530_v36 }
 0x3a6   : > { %1044 = vmatpush1.bf16.msra.mxu1 %v1473_v42 }
 0x3a7   : > { %1045 = vmatprep.subr.bf16.mxu1 %v1481_v44 }
 0x3aa   : > { %1046 = vmatpush1.bf16.msra.mxu1 %v1479_v47 }
 0x3ab   : > { %1047 = vmatprep.subr.bf16.mxu1 %v1487_v52 }
 0x3ae   : > { %1048 = vmatpush1.bf16.msra.mxu1 %v1485_v54 }
 0x3af   : > { %1049 = vmatprep.subr.bf16.mxu1 %v1493_v56 }
 0x3b2   : > { %1050 = vmatpush1.bf16.msra.mxu1 %v1491_v58 }
 0x3b3   : > { %1051 = vmatprep.subr.bf16.mxu1 %v1499_v60 }
 0x3b6   : > { %1052 = vmatpush1.bf16.msra.mxu1 %v1497_v62 }
 0x464   : > { %v1935_v15 = vpop.f32.mrb[4].mxu1 }
 0x465   : > { %580 = vrot.lane.b32.xlu1 %v1935_v15, %s1694_s15  ;;  %v1355_v16 = vpop.f32.mrb[5].mxu1 }
 0x466   : > { %v1938_v17 = vpop.f32.mrb[6].mxu1 }
 0x467   : > { %582 = vrot.lane.b32.xlu0 %v1938_v17, %s1694_s15  ;;  %v1356_v18 = vpop.f32.mrb[7].mxu1 }
 0x468   : > { %v1505_v18 = vld [vmem:[#allocation5 + $0xa4] ss:$8 sps:$4 sm:$0xff]  }
 0x469   : > { %1053 = vmatprep.subr.bf16.mxu1 %v1505_v18 }
 0x46a   : > { %1054 = vmatpush1.bf16.msra.mxu1 %v1503_v19 }
 0x4d7   : > { %v581_v1 = vpop.permute.xlu1 %580 }
 0x4d8   : > { %v586_v5 = vadd.f32 %v581_v1, %v1935_v15 }
 0x4d9   : > { %v583_v7 = vpop.permute.xlu0 %582 }
 0x4da   : > { %v1266_v8 = vmul.f32 -1.442695, %v586_v5  ;;  %v587_v9 = vadd.f32 %v583_v7, %v1938_v17  ;;  %v1511_v17 = vld [vmem:[#allocation5 + $0xb4] ss:$8 sps:$4 sm:$0xff]  }
 0x4db   : > { %1055 = vmatprep.subr.bf16.mxu1 %v1511_v17 }
 0x4dc   : > { %1536 = vpow2.f32 %v1266_v8  ;;  %v1267_v10 = vmul.f32 -1.442695, %v587_v9  ;;  %1056 = vmatpush1.bf16.msra.mxu1 %v1509_v22 }
 0x4dd   : > { %1057 = vmatprep.subr.bf16.mxu1 %v1517_v25 }
 0x4de   : > { %1538 = vpow2.f32 %v1267_v10 }
 0x4e0   : > { %1058 = vmatpush1.bf16.msra.mxu1 %v1515_v26 }
 0x4e1   : > { %1059 = vmatprep.subr.bf16.mxu1 %v1523_v29 }
 0x4e4   : > { %1060 = vmatpush1.bf16.msra.mxu1 %v1521_v30 }
 0x4e5   : > { %1061 = vmatprep.subr.bf16.mxu1 %v1529_v34  ;;  %v1127_v34 = vlaneseq }
 0x4e6   : > { %v1537_v11 = vpop.eup %1536 }
 0x4e7   : > { %v594_v12 = vadd.f32 1.0, %v1537_v11  ;;  %v1128_v36 = vshrl.u32 %v1127_v34, 7 }
 0x4e8   : > { %v1539_v13 = vpop.eup %1538  ;;  %1062 = vmatpush1.bf16.msra.mxu1 %v1527_v33 }
 0x4e9   : > { %1540 = vrcp.f32 %v594_v12  ;;  %v595_v14 = vadd.f32 1.0, %v1539_v13  ;;  %1063 = vmatprep.subr.bf16.mxu1 %v1535_v37  ;;  %v1129_v37 = vsub.s32 0, %v1128_v36 }
 0x4eb   : > { %1542 = vrcp.f32 %v595_v14 }
 0x4ec   : > { %1064 = vmatpush1.bf16.msra.mxu1 %v1533_v38 }
 0x4f3   : > { %v1541_v16 = vpop.eup %1540 }
 0x4f4   : > { %602 = vperm.xlu1 %1435, %v1541_v16  }
 0x4f5   : > { %v1543_v15 = vpop.eup %1542 }
 0x4f8   : > { %607 = vperm.xlu1 %1435, %v1543_v15  }
 0x573   : > { %v603_v39 = vpop.permute.xlu1 %602 }
 0x574   : > { %v1944_v41 = vmul.f32 %v603_v39, %v1912_v45  ;;  %v1947_v42 = vmul.f32 %v603_v39, %v1914_v48 }
 0x577   : > { %v608_v40 = vpop.permute.xlu1 %607 }
 0x578   : > { %v1950_v43 = vmul.f32 %v608_v40, %v1916_v50  ;;  %v1953_v44 = vmul.f32 %v608_v40, %v1918_v51 }
 0x57a   : > { %v614_v46 = vadd.f32 %v1950_v43, %v1944_v41  ;;  %v621_v47 = vadd.f32 %v1953_v44, %v1947_v42  ;;  %v631_v49 = vmax.f32 %v1944_v41, %v1950_v43  ;;  %v638_v45 = vmax.f32 %v1947_v42, %v1953_v44 }
 0x57c   : > { %v615_v48 = vrot.slane %v614_v46, 4  ;;  %v622_v52 = vrot.slane %v621_v47, 4  ;;  %v632_v53 = vrot.slane %v631_v49, 4  ;;  %v639_v50 = vrot.slane %v638_v45, 4 }
 0x57e   : > { %v616_v54 = vadd.f32 %v615_v48, %v614_v46  ;;  %v623_v55 = vadd.f32 %v622_v52, %v621_v47  ;;  %v633_v51 = vmax.f32 %v631_v49, %v632_v53  ;;  %v640_v56 = vmax.f32 %v638_v45, %v639_v50 }
 0x580   : > { %v617_v57 = vrot.slane %v616_v54, 2  ;;  %v634_v58 = vrot.slane %v633_v51, 2  ;;  %v641_v59 = vrot.slane %v640_v56, 2  ;;  %v624_v60 = vrot.slane %v623_v55, 2 }
 0x582   : > { %v618_v61 = vadd.f32 %v617_v57, %v616_v54  ;;  %v635_v62 = vmax.f32 %v633_v51, %v634_v58  ;;  %v642_v63 = vmax.f32 %v640_v56, %v641_v59  ;;  %v625_v0 = vadd.f32 %v624_v60, %v623_v55 }
 0x584   : > { %v643_v1 = vrot.slane %v642_v63, 1  ;;  %v636_v5 = vrot.slane %v635_v62, 1  ;;  %v626_v7 = vrot.slane %v625_v0, 1  ;;  %v619_v8 = vrot.slane %v618_v61, 1 }
 0x586   : > { %v644_v9 = vmax.f32 %v642_v63, %v643_v1  ;;  %v637_v10 = vmax.f32 %v635_v62, %v636_v5  ;;  %v627_v11 = vadd.f32 %v626_v7, %v625_v0  ;;  %v620_v12 = vadd.f32 %v619_v8, %v618_v61 }
 0x588   : > { %v648_v13 = vpack.c.bf16 %v644_v9, %v644_v9  ;;  %v647_v14 = vpack.c.bf16 %v637_v10, %v637_v10  ;;  %v630_v16 = vmul.f32 0.0625, %v627_v11  ;;  %v629_v18 = vmul.f32 0.0625, %v620_v12 }
 0x58a   : > { %1106 = vmatprep.mubr.bf16.mxu0 %v648_v13  ;;  %v646_v19 = vpack.c.bf16 %v630_v16, %v630_v16  ;;  %v645_v20 = vpack.c.bf16 %v629_v18, %v629_v18 }
 0x58b   : > { %1107 = vmatmul.mubr.bf16.vlgmr.msra.gmra.mrb[8].mxu0 %v647_v14 }
 0x58c   : > { %1065 = vmatprep.mubr.bf16.mxu1 %v646_v19 }
 0x58d   : > { %1066 = vmatmul.mubr.bf16.vlgmr.msra.gmra.mrb[8].mxu1 %v645_v20 }
 0x65e   : > { %v1108_v21 = vpop.f32.mrb[8].mxu0 }
 0x65f   : > { %v1110_v15 = vpop.f32.mrb[9].mxu0 }
 0x660   : > { %v1067_v17 = vpop.f32.mrb[8].mxu1  ;;  %v1112_v22 = vpop.f32.mrb[10].mxu0 }
 0x661   : > { %v1109_v23 = vadd.f32 %v1108_v21, %v1067_v17  ;;  %v1069_v24 = vpop.f32.mrb[9].mxu1  ;;  %v1113_v25 = vpop.f32.mrb[11].mxu0 }
 0x662   : > { %v1111_v26 = vadd.f32 %v1110_v15, %v1069_v24  ;;  %v1071_v27 = vpop.f32.mrb[10].mxu1 }
 0x663   : > { %v1332_v28 = vmul.f32 -1.442695, %v1109_v23  ;;  %v1072_v29 = vpop.f32.mrb[11].mxu1 }
 0x664   : > { %v1333_v30 = vmul.f32 -1.442695, %v1111_v26 }
 0x665   : > { %1544 = vpow2.f32 %v1332_v28 }
 0x666   : > { %1546 = vpow2.f32 %v1333_v30 }
 0x66f   : > { %v1545_v31 = vpop.eup %1544 }
 0x670   : > { %v1547_v32 = vpop.eup %1546  ;;  %v1121_v33 = vadd.f32 1.0, %v1545_v31 }
 0x671   : > { %v1122_v35 = vadd.f32 1.0, %v1547_v32 }
 0x672   : > { %1548 = vrcp.f32 %v1121_v33 }
 0x673   : > { %1550 = vrcp.f32 %v1122_v35 }
 0x67c   : > { %v1549_v38 = vpop.eup %1548 }
 0x67d   : > { %v1551_v39 = vpop.eup %1550  ;;  %v1130_v40 = vrot.slane %v1549_v38, %v1129_v37 }
 0x67e   : > { %v1134_v46 = vrot.slane %v1551_v39, %v1129_v37 }
 0x67f   : > { %v1135_v47 = vmul.f32 %v1130_v40, %v1944_v41  ;;  %v1137_v49 = vmul.f32 %v1130_v40, %v1950_v43 }
 0x680   : > { %v1136_v45 = vmul.f32 %v1134_v46, %v1947_v42  ;;  %v1138_v48 = vmul.f32 %v1134_v46, %v1953_v44 }
 0x681   : > { %v1139_v52 = vadd.f32 %v1135_v47, %v1890_v4  ;;  %v1141_v53 = vadd.f32 %v1137_v49, %v1894_v6 }
 0x682   : > { %v1140_v50 = vadd.f32 %v1136_v45, %v1886_v2  ;;  %v1142_v41 = vadd.f32 %v1138_v48, %v1888_v3 }
 0x683   : > { %v1143_v54 = vmax.f32 %v1139_v52, 0.0  ;;  %v1145_v43 = vmax.f32 %v1141_v53, 0.0 }
 0x684   : > { %v1144_v4 = vmax.f32 %v1140_v50, 0.0  ;;  %v1146_v42 = vmax.f32 %v1142_v41, 0.0 }
 0x685   : > { %1147 = vst [vmem:[%s284_s29] sm:$0xff] %v1143_v54  ;;  %1149 = vst [vmem:[%s284_s29 + $0x10] sm:$0xff] %v1145_v43 }
 0x686   : > { %1148 = vst [vmem:[%s284_s29 + $0x8] sm:$0xff] %v1144_v4  ;;  %1150 = vst [vmem:[%s284_s29 + $0x18] sm:$0xff] %v1146_v42 }
 0x687   : > { %1623 = shalt.err (!%p1620_p7)
}
 0x688   : > { %s1624_s26 = scalar_lea.hbm %s1977_s20, 512  ;;  %s1628_s15 = scalar_lea.hbm %s2029_s6, 1024 }
 0x689   : > { %p1625_p9 = scmp.ne.s32.totalorder %s1977_s20, %s1624_s26  ;;  %p1629_p5 = scmp.lt.u32.totalorder %s1977_s20, %s2029_s6 }
 0x68a   : > { %p1630_p11 = scmp.lt.u32.totalorder %s1628_s15, %s1624_s26  ;;  %p1632_p4 = scmp.lt.u32.totalorder %s1624_s26, %s1977_s20 }
 0x68b   : > { %p1626_p2 = pnand %p1625_p9, %p1824_p12 }
 0x68c   : > { %p1631_p1 = por %p1630_p11, %p1629_p5 }
 0x68d   : > { %p1627_p0 = pneg %p1626_p2 }
 0x68e   : > { %p1633_p6 = por %p1632_p4, %p1631_p1 }
 0x690   : > { %p1634_p8 = pnand %p1633_p6, %p1627_p0 }
 0x692   : > { %1637 = shalt.err (!%p1634_p8)
}
 0x693   : > { %s1696_s10 = smov 256   ;;  %s1697_s11 = smov 16  }
 0x694   : > { %1365 = dma.vmem_to_hbm [thread:$0]  (%p1824_p12), %s1979_s19, 512, %s1977_s20, %s1152_s25, %s1696_s10, %s1696_s10, %s1697_s11  }
 0x695 PF: > { %s1180_s17 = sand.u32 1, %s1668_s21   ;;  %p2044_p10 = scmp.ne.s32.totalorder %s2034_s28, 0 }
 0x696   : > { %p2045_p13 = scmp.ge.s32.totalorder %s1680_s24, 2  ;;  %s1181_s18 = scalar_lea.sflag [#allocation4], %s1180_s17 }
 0x698   : > { %p1376_p3 = pnand %p2045_p13, %p2044_p10 }
 0x69a   : > { %1663 = dma.done.wait (!%p1376_p3), %s1181_s18, 512  }
 0x69b   : > { %1665 = vsyncadd (!%p1376_p3), %s1181_s18, 4294966784  ;;  %p20_p7 = scmp.ge.s32.totalorder %s1789_s9, 4   ;;  %s2046_s21 = smov %s1672_s22 }
 0x69c   : > { %s2047_s22 = smov %s1676_s23  ;;  %s2048_s23 = smov %s1820_s13 }
 0x69d   : > { %s2049_s24 = smov %s1789_s9  ;;  %22 = sbr.rel (!%p20_p7) target bundleno = 6 (0x6), region = 93 }
 0x6a4   :  { %1186 = vsyncpa [#allocation3], 1 }
 0x6a5   :  { %1188 = vsyncpa [#allocation3 + $0x1], 1 }
 0x6a6   :  { %1189 = vsyncpa [#allocation6], 1 }
 0x6a7   :  { %1190 = vsyncpa [#allocation4], 1 }
 0x6a8   :  { %1192 = vsyncpa [#allocation4 + $0x1], 1 }

</bundles_post_ra>
